<compile_context>
chip_gen: v5e
topology: v5e:2x2
jax: 0.10.0
libtpu: 0.0.40
codegen_flags: <defaults>
</compile_context>

<pallas_src>
import numpy as np
import jax
import jax.numpy as jnp
from jax.experimental import pallas as pl
from jax.experimental.pallas import tpu as pltpu


def split_layer(total_channels, num_groups):
    split = [int(np.ceil(total_channels / num_groups)) for _ in range(num_groups)]
    split[num_groups - 1] += total_channels - sum(split)
    return split


def _round_up(x, m):
    return ((x + m - 1) // m) * m


# ----------------------------------------------------------------------------
# Pallas kernel: grouped 1x1 conv in native NCHW layout (one fused matmul).
# One grid step = one (batch, hw-tile) pair; the leading batch dim is squeezed.
#   x_ref: (Cin,  t_hw)  activations (sublanes = channels, lanes = H*W)
#   w_ref: (Cout, Cin)   block-diagonal fused weight (per-chunk scale folded in)
#   b_ref: (Cout, 1)     per-out-channel bias (f32)
#   o_ref: (Cout, t_hw)  lane-dense output tile
# ----------------------------------------------------------------------------
def _grouped_conv1x1_kernel(x_ref, w_ref, b_ref, o_ref):
    x = x_ref[...].astype(w_ref.dtype)              # cast (if any) in VMEM, not via an HBM pass
    y = jnp.dot(w_ref[...], x, preferred_element_type=jnp.float32)
    o_ref[...] = (y + b_ref[...]).astype(o_ref.dtype)


def _vmem_budgets():
    """(tiling budget, vmem_limit_bytes); generation-aware (v7x has 64 MiB VMEM)."""
    kind = ""
    try:
        kind = jax.devices()[0].device_kind.lower()
    except Exception:
        pass
    if ("v5" in kind) or ("v6" in kind):            # 128 MiB physical VMEM
        return 48 << 20, 64 << 20
    return 24 << 20, 32 << 20                       # v7x / unknown: stay conservative


def _choose_hw_tile(HW, n_batch, cin, cout, in_itemsize, w_itemsize, out_itemsize,
                    budget_bytes, target_steps=4):
    """Lane tile over H*W: a multiple of 128 (or the full extent), as large as the
    VMEM budget allows, and small enough that the grid has >= target_steps steps
    (>= 2 per TensorCore on v7x; pipeline steady state on v5e/v6e)."""
    # double-buffered x + out tiles per output lane, plus (double-buffered) weight/bias
    per_lane = 2 * (cin * in_itemsize + cout * out_itemsize)
    fixed = 2 * (cout * cin * w_itemsize + cout * 4)
    avail = max(budget_bytes - fixed, 128 * per_lane)
    t = max(128, (avail // per_lane) // 128 * 128)
    q = max(1, -(-target_steps // max(n_batch, 1)))           # want >= q hw tiles
    if q > 1:
        t = min(t, max(128, (HW // q) // 128 * 128))
    if t >= HW:
        t = HW           # single full-extent block (no 128-alignment needed then)
    return int(t)


def grouped_conv1x1_nchw(x, w_fused, b_fused, *, out_dtype=None):
    """x: (N, Cin, HW), w_fused: (Cout, Cin), b_fused: (Cout, 1) -> (N, Cout, HW)."""
    N, Cin, HW = x.shape
    Cout, Kw = w_fused.shape
    assert Kw == Cin
    if out_dtype is None:
        out_dtype = x.dtype

    vmem_budget, vmem_limit = _vmem_budgets()
    t_hw = _choose_hw_tile(
        HW, N, Cin, Cout,
        jnp.dtype(x.dtype).itemsize,
        jnp.dtype(w_fused.dtype).itemsize,
        jnp.dtype(out_dtype).itemsize,
        vmem_budget,
    )
    n_hw = pl.cdiv(HW, t_hw)        # no padding of x: the edge block is partial

    return pl.pallas_call(
        _grouped_conv1x1_kernel,
        out_shape=jax.ShapeDtypeStruct((N, Cout, HW), out_dtype),
        grid_spec=pltpu.PrefetchScalarGridSpec(
            num_scalar_prefetch=0,
            grid=(N, n_hw),
            in_specs=[
                pl.BlockSpec((None, Cin, t_hw), lambda n, j: (n, 0, j)),
                pl.BlockSpec((Cout, Cin), lambda n, j: (0, 0)),   # grid-invariant
                pl.BlockSpec((Cout, 1), lambda n, j: (0, 0)),     # grid-invariant
            ],
            out_specs=pl.BlockSpec((None, Cout, t_hw), lambda n, j: (n, 0, j)),
        ),
        compiler_params=pltpu.CompilerParams(
            dimension_semantics=("parallel", "parallel"),
            vmem_limit_bytes=int(vmem_limit),
        ),
    )(x, w_fused, b_fused)


# ----------------------------------------------------------------------------
# GroupConv2D wrapper (glue in plain JAX)
# ----------------------------------------------------------------------------
class GroupConv2DPallas:
    def __init__(self, in_channels, out_channels, kernel_size=1, n_chunks=1,
                 key=None, compute_dtype=jnp.bfloat16, out_dtype=jnp.float32):
        assert kernel_size == 1, "MixNet-S GroupConv2D uses the default 1x1 kernel"
        if key is None:
            key = jax.random.PRNGKey(0)
        self.n_chunks = n_chunks
        self.in_channels = in_channels
        self.out_channels = out_channels
        self.split_in = split_layer(in_channels, n_chunks)
        self.split_out = split_layer(out_channels, n_chunks)
        self.compute_dtype = compute_dtype
        self.out_dtype = out_dtype

        # Per-chunk parameters (mirroring the PyTorch module's per-chunk Conv2D_INT)
        self.weights, self.scales, self.biases = [], [], []
        for idx in range(n_chunks):
            key, sub = jax.random.split(key)
            cin, cout = self.split_in[idx], self.split_out[idx]
            w = jax.random.normal(sub, (cin, cout), dtype=jnp.float32) / np.sqrt(cin)
            self.weights.append(w)
            self.scales.append(jnp.ones((cout,), jnp.float32))
            self.biases.append(jnp.zeros((cout,), jnp.float32))

        # ONE block-diagonal weight (Cout_total, Cin_total) with scale folded in,
        # plus one (Cout_total, 1) bias column.  No lane padding needed: channels
        # live on the sublane axis in the NCHW-native kernel.
        self.cout_total = sum(self.split_out)
        w_full = np.zeros((self.cout_total, in_channels), np.float32)
        b_full = np.zeros((self.cout_total, 1), np.float32)
        ri = ci = 0
        for idx in range(n_chunks):
            cin, cout = self.split_in[idx], self.split_out[idx]
            w_scaled = np.asarray(self.weights[idx]) * np.asarray(self.scales[idx])[None, :]
            w_full[ci:ci + cout, ri:ri + cin] = w_scaled.T
            b_full[ci:ci + cout, 0] = np.asarray(self.biases[idx])
            ri += cin
            ci += cout
        self.w_fused = jnp.asarray(w_full, compute_dtype)
        self.b_fused = jnp.asarray(b_full, jnp.float32)

    def __call__(self, x):
        """x: (N, C_in, H, W) -> (N, C_out, H, W)."""
        N, C, H, W = x.shape
        assert C == self.in_channels == sum(self.split_in)
        # TODO(synk): Quantization() body not given in the source; treated as identity.
        xm = x.reshape(N, C, H * W)          # free reshape, stays in native NCHW layout
        ym = grouped_conv1x1_nchw(xm, self.w_fused, self.b_fused,
                                  out_dtype=self.out_dtype)
        return ym.reshape(N, self.cout_total, H, W)


# ----------------------------------------------------------------------------
def _reference(model, x):
    """Pure-JAX reference (per-chunk einsum + scale + bias, then concat)."""
    outs = []
    c0 = 0
    for idx in range(model.n_chunks):
        cin = model.split_in[idx]
        xs = x[:, c0:c0 + cin, :, :]
        c0 += cin
        y = jnp.einsum('nchw,cd->ndhw', xs, model.weights[idx])
        y = y * model.scales[idx][None, :, None, None] \
              + model.biases[idx][None, :, None, None]
        outs.append(y)
    return jnp.concatenate(outs, axis=1)


if __name__ == "__main__":
    key = jax.random.PRNGKey(0)
    kx, kp = jax.random.split(key)

    # small shapes consistent with the module: batch=2, in_ch=4, out_ch=8, 16x16
    N, Cin, H, W = 2, 4, 16, 16
    Cout, n_chunks = 8, 2
    x = jax.random.normal(kx, (N, Cin, H, W), dtype=jnp.float32)

    # f32-operand path -> tight check against the pure-JAX reference
    model = GroupConv2DPallas(Cin, Cout, kernel_size=1, n_chunks=n_chunks,
                              key=kp, compute_dtype=jnp.float32)
    out = jax.block_until_ready(model(x))
    ref = _reference(model, x)
    assert out.shape == (N, Cout, H, W)
    np.testing.assert_allclose(np.asarray(out), np.asarray(ref), rtol=1e-4, atol=1e-4)

    # default bf16-operand path (halves streamed weight bytes; f32 accumulate) -> loose check
    model_bf16 = GroupConv2DPallas(Cin, Cout, kernel_size=1, n_chunks=n_chunks, key=kp)
    out_bf16 = jax.block_until_ready(model_bf16(x))
    np.testing.assert_allclose(np.asarray(out_bf16), np.asarray(ref), rtol=1e-1, atol=1e-1)

    print("KERNEL_OK")
</pallas_src>

<mosaic_0001>
module attributes {stable_mosaic.version = 11 : i64} {
  func.func @_grouped_conv1x1_kernel(%arg0: i32, %arg1: i32, %arg2: memref<1x4x128xf32, #tpu.memory_space<vmem>>, %arg3: memref<8x4xf32, #tpu.memory_space<vmem>>, %arg4: memref<8x1xf32, #tpu.memory_space<vmem>>, %arg5: memref<1x8x128xf32, #tpu.memory_space<vmem>>) attributes {dimension_semantics = [#tpu.dimension_semantics<parallel>, #tpu.dimension_semantics<parallel>], iteration_bounds = array<i64: 2, 2>, scalar_prefetch = 0 : i64, scratch_operands = 0 : i64, tpu.core_type = #tpu.core_type<tc>, window_params = [{transform_indices = @transform_0, window_bounds = array<i64: 1, 4, 128>}, {pipeline_mode = #tpu.pipeline_mode<synchronous>, transform_indices = @transform_1, window_bounds = array<i64: 8, 4>}, {pipeline_mode = #tpu.pipeline_mode<synchronous>, transform_indices = @transform_2, window_bounds = array<i64: 8, 1>}, {transform_indices = @transform_3, window_bounds = array<i64: 1, 8, 128>}]} {
    %c0 = arith.constant 0 : index
    %c0_0 = arith.constant 0 : index
    %c0_1 = arith.constant 0 : index
    %0 = vector.load %arg2[%c0, %c0_0, %c0_1] : memref<1x4x128xf32, #tpu.memory_space<vmem>>, vector<1x4x128xf32>
    %1 = vector.shape_cast %0 : vector<1x4x128xf32> to vector<4x128xf32>
    %c0_2 = arith.constant 0 : index
    %c0_3 = arith.constant 0 : index
    %2 = vector.load %arg3[%c0_2, %c0_3] : memref<8x4xf32, #tpu.memory_space<vmem>>, vector<8x4xf32>
    %cst = arith.constant dense<0.000000e+00> : vector<8x128xf32>
    %3 = tpu.matmul %2, %1, %cst {dimension_numbers = #tpu.dot_dimension_numbers<[1], [0], [0], [1], [0, 0, 1, 1], [], []>} : vector<8x4xf32>, vector<4x128xf32>, vector<8x128xf32> -> vector<8x128xf32>
    %c0_4 = arith.constant 0 : index
    %c0_5 = arith.constant 0 : index
    %4 = vector.load %arg4[%c0_4, %c0_5] : memref<8x1xf32, #tpu.memory_space<vmem>>, vector<8x1xf32>
    %5 = vector.broadcast %4 : vector<8x1xf32> to vector<8x128xf32>
    %6 = arith.addf %3, %5 : vector<8x128xf32>
    %c0_6 = arith.constant 0 : index
    %c0_7 = arith.constant 0 : index
    %c0_8 = arith.constant 0 : index
    %7 = vector.load %arg5[%c0_6, %c0_7, %c0_8] : memref<1x8x128xf32, #tpu.memory_space<vmem>>, vector<1x8x128xf32>
    %8 = vector.shape_cast %7 : vector<1x8x128xf32> to vector<8x128xf32>
    %9 = vector.shape_cast %6 : vector<8x128xf32> to vector<1x8x128xf32>
    tpu.vector_store %arg5[%c0_6, %c0_7, %c0_8], %9 {strides = array<i32>} : memref<1x8x128xf32, #tpu.memory_space<vmem>>, vector<1x8x128xf32>,
    return
  }
  func.func @transform_0(%arg0: i32, %arg1: i32) -> (i32, i32, i32) {
    %c0_i32 = arith.constant 0 : i32
    %c0_i32_0 = arith.constant 0 : i32
    return %arg0, %c0_i32, %arg1 : i32, i32, i32
  }
  func.func @transform_1(%arg0: i32, %arg1: i32) -> (i32, i32) {
    %c0_i32 = arith.constant 0 : i32
    %c0_i32_0 = arith.constant 0 : i32
    %c0_i32_1 = arith.constant 0 : i32
    return %c0_i32, %c0_i32_0 : i32, i32
  }
  func.func @transform_2(%arg0: i32, %arg1: i32) -> (i32, i32) {
    %c0_i32 = arith.constant 0 : i32
    %c0_i32_0 = arith.constant 0 : i32
    %c0_i32_1 = arith.constant 0 : i32
    return %c0_i32, %c0_i32_0 : i32, i32
  }
  func.func @transform_3(%arg0: i32, %arg1: i32) -> (i32, i32, i32) {
    %c0_i32 = arith.constant 0 : i32
    %c0_i32_0 = arith.constant 0 : i32
    return %arg0, %c0_i32, %arg1 : i32, i32, i32
  }
}

</mosaic_0001>

<bundles_post_ra>
// kernel: tpu_custom_call.1
= control target key start
LH: loop header
LB: loop body
LE: loop exit
PB: predicated region body
PF: predicated region fallthrough
CT: control target
= control target key end

     0   :  { %8 = vsyncpa [#allocation3], 0  ;;  %s660_s0 = inlined_call_operand.vmem [shape: f32[2,4,256], index: 0, kind: input, shape index: {}]   ;;  %s661_s1 = inlined_call_operand.vmem [shape: f32[8,4], index: 1, kind: input, shape index: {}]   ;;  %s662_s2 = inlined_call_operand.vmem [shape: f32[8,1], index: 2, kind: input, shape index: {}]   ;;  %s663_s3 = inlined_call_operand.hbm [shape: f32[2,8,256], index: 3, kind: output, shape index: {}]  }
   0x1   :  { %10 = vsyncpa [#allocation3 + $0x1], 0  ;;  %s532_s12 = smov 0   ;;  %s534_s13 = smov 0  }
   0x2   :  { %s536_s14 = smov 0   ;;  %s538_s15 = smov 0  }
   0x3   :  { %s540_s16 = smov 0   ;;  %s542_s17 = smov 0  }
   0x4   :  { %s544_s18 = smov 0   ;;  %s546_s19 = smov 0  }
   0x5 LB: > { %s327_s20 = sadd.s32 4294967295, %s509_s19   ;;  %s328_s21 = sadd.s32 4294967294, %s509_s19   ;;  %s509_s19 = sphi %s546_s19, %s16_s19   ;;  %s505_s18 = sphi %s544_s18, %s672_s18   ;;  %s501_s17 = sphi %s542_s17, %s671_s17   ;;  %s497_s16 = sphi %s540_s16, %s670_s16   ;;  %s493_s15 = sphi %s538_s15, %s669_s15   ;;  %s489_s14 = sphi %s536_s14, %s668_s14   ;;  %s485_s13 = sphi %s534_s13, %s667_s13   ;;  %s481_s12 = sphi %s532_s12, %s666_s12  }
   0x6   : > { %s25_s22 = sadd.s32 1, %s501_s17  ;;  %s28_s23 = sadd.s32 1, %s505_s18 }
   0x7   : > { %p26_p0 = scmp.ge.s32.totalorder %s25_s22, 2  ;;  %p117_p1 = scmp.ne.s32.totalorder %s489_s14, %s485_s13 }
   0x8   : > { %p118_p2 = scmp.eq.s32.totalorder %s327_s20, 3  ;;  %p123_p5 = scmp.ne.s32.totalorder %s485_s13, %s481_s12 }
   0x9   : > { %s674_s22 = smov (%p26_p0, %s25_s22), 0  ;;  %s676_s23 = smov (!%p26_p0, %s28_s23), %s505_s18 }
   0xa   : > { %s103_s24 = ssub.s32 %s501_s17, %s674_s22  ;;  %p583_p3 = por %p118_p2, %p117_p1 }
   0xb   : > { %p30_p4 = scmp.ge.s32.totalorder %s676_s23, 2  ;;  %p124_p6 = scmp.eq.s32.totalorder %s328_s21, 3 }
   0xc   : > { %p331_p7 = scmp.ge.s32.totalorder %s509_s19, 1  ;;  %p159_p9 = scmp.lt.s32.totalorder %s509_s19, 5 }
   0xd   : > { %s678_s23 = smov (%p30_p4, %s676_s23), 0  ;;  %p592_p8 = por %p124_p6, %p123_p5 }
   0xe   : > { %s102_s27 = ssub.s32 %s505_s18, %s678_s23  ;;  %s107_s28 = sadd.s32 1, %s489_s14 }
   0xf   : > { %s104_s29 = sor.u32 %s103_s24, %s102_s27  ;;  %p160_p10 = pnand %p331_p7, %p159_p9 }
  0x10   : > { %p105_p11 = scmp.eq.s32.totalorder %s104_s29, 0  ;;  %p186_p12 = scmp.lt.s32.totalorder (!%p160_p10), %s497_s16, 1 }
  0x11   : > { %163 = sbr.rel (%p160_p10) target bundleno = 161 (0xa1), region = 32  ;;  %p188_p13 = scmp.lt.s32.totalorder (!%p160_p10), %s493_s15, 1 }
  0x12   : > { %s601_s30 = scalar_select %p105_p11, %s489_s14, %s107_s28  }
  0x13   : > { %s338_s28 = sshll.u32 (!%p160_p10), %s497_s16, 1  ;;  %s183_s29 = sand.u32 (!%p160_p10), 1, %s485_s13  }
  0x14   : > { %s242_s4 = sadd.s32 (!%p160_p10), %s493_s15, %s338_s28  ;;  %s332_s5 = sshll.u32 (!%p160_p10), %s183_s29, 3 }
  0x15   : > { %s435_s28 = scalar_lea.hbm (!%p160_p10), %s663_s3, 32 }
  0x16   : > { %v511_v0 = vmov 0   ;;  %v196_v1 = vld [vmem:[%s662_s2] sm:$0xff]  ;;  %s187_s6 = scalar_select %p186_p12, %s497_s16, 1  ;;  %vm206_vm0 = vcmask 1043456   ;;  %vm202_vm1 = vcmask 31744  }
  0x17   : > { %414 = vset.pattern.permute.xlu0 %v511_v0  ;;  %s189_s7 = scalar_select %p188_p13, %s493_s15, 1  ;;  %v195_v2 = vld [vmem:[%s661_s1] sm:$0xff] }
  0x18   : > { %199 = vperm.xlu0 %414, %v196_v1   ;;  %s333_s8 = sshll.u32 %s187_s6, 1  ;;  %s339_s6 = sshll.u32 %s242_s4, 3 }
  0x19   : > { %s191_s9 = sadd.s32 %s333_s8, %s189_s7 }
  0x1a   : > { %s334_s10 = sshll.u32 %s191_s9, 2  ;;  %s244_s9 = scalar_lea.hbm %s663_s3, %s339_s6 }
  0x1b   : > { %s193_s21 = scalar_lea.vmem %s660_s0, %s334_s10  ;;  %s185_s10 = scalar_lea.vmem [#allocation2], %s332_s5 }
  0x1c   : > { %v194_v3 = vld [vmem:[%s193_s21] sm:$0xf]  ;;  %s246_s11 = sshll.u32 %s185_s10, 4  ;;  %s248_s20 = sshll.u32 %s244_s9, 4  ;;  %s247_s11 = int_to_ptr.vmem [resolvable:$true] %s246_s11  ;;  %s249_s20 = int_to_ptr.hbm [resolvable:$true] %s248_s20 }
  0x1d   : > { %335 = vmatpush.msk.msra.mxu0 %vm206_vm0, %v194_v3  ;;  %s232_s21 = scalar_lea.sflag [#allocation3], %s183_s29  ;;  %s429_s16 = sshra.s32 %s249_s20, 4  ;;  %s430_s16 = int_to_ptr.hbm [resolvable:$true] %s429_s16 }
  0x1e   : > { %336 = vmatmul.msk.f32.vlgmr.msra.gmra.mxu0 %vm202_vm1, %v195_v2  ;;  %s431_s15 = scalar_lea.hbm %s430_s16, 8  ;;  %p436_p4 = scmp.lt.s32.totalorder %s430_s16, %s663_s3 }
  0x1f   : > { %p432_p0 = scmp.ne.s32.totalorder %s430_s16, %s431_s15  ;;  %p437_p5 = scmp.lt.s32.totalorder %s435_s28, %s431_s15 }
  0x21   : > { %p433_p1 = pnand %p432_p0, %p583_p3  ;;  %p438_p6 = por %p437_p5, %p436_p4 }
  0x23   : > { %p434_p2 = pneg %p433_p1 }
  0x25   : > { %p439_p7 = pnand %p438_p6, %p434_p2 }
  0x8a   : > { %v200_v4 = vpop.permute.xlu0 %199 }
  0x9b   : > { %v227_v5 = vpop.f32.mrf.mxu0 }
  0x9c   : > { %v228_v6 = vadd.f32 %v227_v5, %v200_v4 }
  0x9e   : > { %230 = vst [vmem:[%s185_s10] sm:$0xff] %v228_v6 }
  0x9f   : > { %442 = shalt.err (!%p439_p7)
}
  0xa0   : > { %342 = dma.vmem_to_hbm [thread:$0]  (%p583_p3), %s247_s11, 128, %s249_s20, %s232_s21  }
  0xa1 PF: > { %p348_p9 = scmp.ge.s32.totalorder %s509_s19, 2  ;;  %s260_s29 = sand.u32 1, %s481_s12  }
  0xa2   : > { %s261_s6 = scalar_lea.sflag [#allocation3], %s260_s29 }
  0xa3   : > { %p345_p10 = pnand %p348_p9, %p592_p8 }
  0xa5   : > { %p346_p11 = pneg %p345_p10 }
  0xa7   : > { %476 = dma.done.wait (%p346_p11), %s261_s6, 128  }
  0xa8   : > { %478 = vsyncadd (%p346_p11), %s261_s6, 4294967168  ;;  %s16_s19 = sadd.s32 1, %s509_s19   ;;  %s666_s12 = smov %s485_s13 }
  0xa9   : > { %p13_p12 = scmp.ge.s32.totalorder %s16_s19, 6   ;;  %s667_s13 = smov %s489_s14 }
  0xaa   : > { %s668_s14 = smov %s601_s30  ;;  %s669_s15 = smov %s501_s17 }
  0xab   : > { %s670_s16 = smov %s505_s18  ;;  %s671_s17 = smov %s674_s22 }
  0xac   : > { %s672_s18 = smov %s678_s23  ;;  %15 = sbr.rel (!%p13_p12) target bundleno = 5 (0x5), region = 67 }
  0xb1   :  { %267 = vsyncpa [#allocation3], 1 }
  0xb2   :  { %269 = vsyncpa [#allocation3 + $0x1], 1 }

</bundles_post_ra>
